<compile_context>
chip_gen: v5e
topology: v5e:2x2
jax: 0.10.0
libtpu: 0.0.40
codegen_flags: <defaults>
</compile_context>

<pallas_src>
import jax
import jax.numpy as jnp
import numpy as np
from jax.experimental import pallas as pl
from jax.experimental.pallas import tpu as pltpu

EPS = 1e-5


def _round_up(a, b):
    return (a + b - 1) // b * b


def _pick_tile(total, max_tile):
    """Lane tile: multiple of 128, <= max_tile, with modest padding waste."""
    top = min((max_tile // 128) * 128, _round_up(total, 128))
    for t in range(top, 127, -128):
        if _round_up(total, t) - total <= max(total // 8, 127):
            return t
    return 128


def _vmem_limit_bytes():
    """Generation-aware scoped-VMEM cap (v5e/v6e: 64 MiB, v7x: ~45 MiB)."""
    try:
        cap = pltpu.get_tpu_info().vmem_capacity_bytes
    except Exception:  # conservative fallback, safe on every generation
        cap = 64 * 1024 * 1024
    return int(min(64 * 1024 * 1024, max(32 * 1024 * 1024, 0.7 * cap)))


def conv_stats_kernel(w_ref, p_ref, conv_ref, s1_ref, s2_ref):
    """One bf16 MXU matmul per column tile + lane-partial BN statistics.

    w_ref   : (Cp, Kp)    bf16  im2col weights (Kp = padded 9*Cin), resident
    p_ref   : (Kp, TCOL)  bf16  im2col patch columns for this (batch, tile)
    conv_ref: (Cp, TCOL)  bf16  conv output tile (lane-dense store)
    s1_ref  : (Cp, 128)   f32   lane-partial sum for this tile
    s2_ref  : (Cp, 128)   f32   lane-partial sum of squares for this tile
    """
    acc = jnp.dot(w_ref[...], p_ref[...], preferred_element_type=jnp.float32)
    conv_ref[...] = acc.astype(conv_ref.dtype)

    # Stats are computed from the stored bf16 values (exactly what bn_relu
    # normalizes).  Reading 128-lane slices back from VMEM keeps register
    # pressure tiny at realistic Cp/tcol; vector-load slots are idle in this
    # memory-bound kernel so this work is free filler.
    s1_ref[...] = jnp.zeros_like(s1_ref)
    s2_ref[...] = jnp.zeros_like(s2_ref)
    tcol = conv_ref.shape[-1]
    for i in range(tcol // 128):
        blk = conv_ref[:, i * 128:(i + 1) * 128].astype(jnp.float32)
        s1_ref[...] += blk
        s2_ref[...] += blk * blk


def bn_relu_kernel(conv_ref, scale_ref, shift_ref, o_ref):
    """Fused per-channel affine (folded BatchNorm) + ReLU; lane-dense in/out.

    conv_ref    : (Cp, THW)   bf16 staging tile
    scale/shift : (Cp, 1)     f32
    o_ref       : (Cout, THW) f32, already in (N, C, H*W) output layout
    """
    x = conv_ref[...].astype(jnp.float32)
    y = jnp.maximum(x * scale_ref[...] + shift_ref[...], 0.0)
    o_ref[...] = y[:o_ref.shape[0], :]


def standard_cnn_block(x_nchw, w_oihw, bias, gamma, beta, *,
                       conv_tile_max=1024, bn_tile_max=2048):
    """Forward of StandardCNNBlock.  Input/Output are NCHW like PyTorch."""
    # A per-channel constant added before the batch-mean subtraction cancels
    # exactly in training-mode BatchNorm, so the conv bias is dropped.
    # TODO(synk): re-apply the bias if BN is ever run in eval mode with
    # running statistics.
    del bias

    N, Cin, H, W = x_nchw.shape
    Cout = w_oihw.shape[0]
    HW = H * W
    K = 9 * Cin
    Kp = _round_up(K, 16)                    # bf16 sublane-tile friendly
    Cp = _round_up(Cout, 8)                  # sublane-aligned channel dim

    tcol = _pick_tile(HW, conv_tile_max)     # conv column tile (lanes)
    HWp = _round_up(HW, tcol)
    G = HWp // tcol
    assert tcol % 128 == 0 and HWp % tcol == 0 and Cp % 8 == 0 and Kp % 16 == 0

    # bn/relu has no matmul-operand constraint -> use a bigger lane tile.
    m = 1
    for cand in range(G, 0, -1):
        if G % cand == 0 and cand * tcol <= bn_tile_max:
            m = cand
            break
    thw = m * tcol
    Gb = HWp // thw

    # --- im2col, built directly in bf16 with the batch as a leading dim so no
    # transposes are needed: P[n, (kh,kw,ci), h*W+w] = xpad[n, ci, h+kh, w+kw].
    xb = jnp.pad(x_nchw.astype(jnp.bfloat16), ((0, 0), (0, 0), (1, 1), (1, 1)))
    taps = [xb[:, :, kh:kh + H, kw:kw + W].reshape(N, Cin, HW)
            for kh in range(3) for kw in range(3)]
    P = jnp.concatenate(taps, axis=1)                       # (N, 9*Cin, HW)
    # Zero row/col padding is exact: padded rows hit zero weight columns and
    # padded columns produce conv==0, contributing nothing to the BN sums
    # (the true element count is used below).
    P = jnp.pad(P, ((0, 0), (0, Kp - K), (0, HWp - HW)))

    # Weights (Cout, Cin, 3, 3) -> (Cp, Kp) with column order (kh, kw, ci).
    Wm = jnp.transpose(w_oihw.astype(jnp.float32), (0, 2, 3, 1)).reshape(Cout, K)
    Wm = jnp.pad(Wm, ((0, Cp - Cout), (0, Kp - K))).astype(jnp.bfloat16)

    cparams = pltpu.CompilerParams(
        dimension_semantics=("parallel", "parallel"),
        vmem_limit_bytes=_vmem_limit_bytes())

    conv, s1p, s2p = pl.pallas_call(
        conv_stats_kernel,
        out_shape=(
            jax.ShapeDtypeStruct((N, Cp, HWp), jnp.bfloat16),
            jax.ShapeDtypeStruct((N, G, Cp, 128), jnp.float32),
            jax.ShapeDtypeStruct((N, G, Cp, 128), jnp.float32),
        ),
        grid_spec=pltpu.PrefetchScalarGridSpec(
            num_scalar_prefetch=0,
            grid=(N, G),
            in_specs=[
                pl.BlockSpec((Cp, Kp), lambda n, g: (0, 0)),           # resident
                pl.BlockSpec((None, Kp, tcol), lambda n, g: (n, 0, g)),
            ],
            out_specs=(
                pl.BlockSpec((None, Cp, tcol), lambda n, g: (n, 0, g)),
                pl.BlockSpec((None, None, Cp, 128), lambda n, g: (n, g, 0, 0)),
                pl.BlockSpec((None, None, Cp, 128), lambda n, g: (n, g, 0, 0)),
            ),
        ),
        compiler_params=cparams,
        cost_estimate=pl.CostEstimate(
            flops=2 * Cp * Kp * N * HWp,
            transcendentals=0,
            bytes_accessed=(2 * Cp * Kp + 2 * N * Kp * HWp
                            + 2 * N * Cp * HWp + 2 * 4 * N * G * Cp * 128)),
    )(Wm, P)

    # Finalize BN statistics (tiny per-channel math).  One-pass variance
    # E[x^2]-E[x]^2, clamped at 0 against cancellation.
    cnt = jnp.float32(N * HW)
    s1 = jnp.sum(s1p, axis=(0, 1, 3))
    s2 = jnp.sum(s2p, axis=(0, 1, 3))
    mean = s1 / cnt
    var = jnp.maximum(s2 / cnt - mean * mean, 0.0)
    gamma_p = jnp.pad(gamma.astype(jnp.float32), (0, Cp - Cout),
                      constant_values=1.0)
    beta_p = jnp.pad(beta.astype(jnp.float32), (0, Cp - Cout))
    scale = gamma_p * jax.lax.rsqrt(var + EPS)
    shift = beta_p - mean * scale

    out_t = pl.pallas_call(
        bn_relu_kernel,
        out_shape=jax.ShapeDtypeStruct((N, Cout, HWp), jnp.float32),
        grid_spec=pltpu.PrefetchScalarGridSpec(
            num_scalar_prefetch=0,
            grid=(N, Gb),
            in_specs=[
                pl.BlockSpec((None, Cp, thw), lambda n, j: (n, 0, j)),
                pl.BlockSpec((Cp, 1), lambda n, j: (0, 0)),
                pl.BlockSpec((Cp, 1), lambda n, j: (0, 0)),
            ],
            out_specs=pl.BlockSpec((None, Cout, thw), lambda n, j: (n, 0, j)),
        ),
        compiler_params=cparams,
        cost_estimate=pl.CostEstimate(
            flops=3 * N * Cp * HWp,
            transcendentals=0,
            bytes_accessed=2 * N * Cp * HWp + 4 * N * Cout * HWp + 8 * Cp),
    )(conv, scale.reshape(Cp, 1), shift.reshape(Cp, 1))

    # Output is already (N, Cout, H*W): reshape is free, column slice is an
    # identity when HW is lane-aligned (as in the test shapes).
    return out_t[:, :, :HW].reshape(N, Cout, H, W)


def reference(x_nchw, w_oihw, bias, gamma, beta):
    """Plain-JAX reference (exact f32) for correctness checking."""
    y = jax.lax.conv_general_dilated(
        x_nchw, w_oihw, window_strides=(1, 1), padding="SAME",
        dimension_numbers=("NCHW", "OIHW", "NCHW"))
    y = y + bias.reshape(1, -1, 1, 1)
    mean = jnp.mean(y, axis=(0, 2, 3), keepdims=True)
    var = jnp.mean((y - mean) ** 2, axis=(0, 2, 3), keepdims=True)
    y = (y - mean) * jax.lax.rsqrt(var + EPS)
    y = y * gamma.reshape(1, -1, 1, 1) + beta.reshape(1, -1, 1, 1)
    return jnp.maximum(y, 0.0)


if __name__ == "__main__":
    # Small shapes consistent with the module: N=2, Cin=4, Cout=8, 16x16.
    N, Cin, Cout, H, W = 2, 4, 8, 16, 16

    key = jax.random.PRNGKey(0)
    kx, kw, kb, kg, kbt = jax.random.split(key, 5)

    x = jax.random.normal(kx, (N, Cin, H, W), dtype=jnp.float32)

    # PyTorch-style parameter shapes:
    #   conv.weight: (Cout, Cin, 3, 3), conv.bias: (Cout,)
    #   bn.weight (gamma), bn.bias (beta)
    fan_in = Cin * 3 * 3
    bound = 1.0 / np.sqrt(fan_in)
    w = jax.random.uniform(kw, (Cout, Cin, 3, 3),
                           minval=-bound, maxval=bound, dtype=jnp.float32)
    b = jax.random.uniform(kb, (Cout,),
                           minval=-bound, maxval=bound, dtype=jnp.float32)
    gamma = jax.random.uniform(kg, (Cout,), minval=0.5, maxval=1.5,
                               dtype=jnp.float32)
    beta = 0.1 * jax.random.normal(kbt, (Cout,), dtype=jnp.float32)

    fwd = jax.jit(standard_cnn_block)
    out = jax.block_until_ready(fwd(x, w, b, gamma, beta))
    ref = jax.block_until_ready(reference(x, w, b, gamma, beta))

    # bf16 matmul operands / bf16 staging (f32 accumulation & BN math) =>
    # slightly looser tolerance than pure f32.
    np.testing.assert_allclose(np.asarray(out), np.asarray(ref),
                               rtol=2e-2, atol=2e-2)
    assert out.shape == (N, Cout, H, W)
    print("KERNEL_OK")
</pallas_src>

<mosaic_0001>
module attributes {stable_mosaic.version = 11 : i64} {
  func.func @conv_stats_kernel(%arg0: i32, %arg1: i32, %arg2: memref<8x48xbf16, #tpu.memory_space<vmem>>, %arg3: memref<1x48x256xbf16, #tpu.memory_space<vmem>>, %arg4: memref<1x8x256xbf16, #tpu.memory_space<vmem>>, %arg5: memref<1x1x8x128xf32, #tpu.memory_space<vmem>>, %arg6: memref<1x1x8x128xf32, #tpu.memory_space<vmem>>) attributes {dimension_semantics = [#tpu.dimension_semantics<parallel>, #tpu.dimension_semantics<parallel>], iteration_bounds = array<i64: 2, 1>, scalar_prefetch = 0 : i64, scratch_operands = 0 : i64, tpu.core_type = #tpu.core_type<tc>, window_params = [{pipeline_mode = #tpu.pipeline_mode<synchronous>, transform_indices = @transform_0, window_bounds = array<i64: 8, 48>}, {transform_indices = @transform_1, window_bounds = array<i64: 1, 48, 256>}, {transform_indices = @transform_2, window_bounds = array<i64: 1, 8, 256>}, {transform_indices = @transform_3, window_bounds = array<i64: 1, 1, 8, 128>}, {transform_indices = @transform_4, window_bounds = array<i64: 1, 1, 8, 128>}]} {
    %c0 = arith.constant 0 : index
    %c0_0 = arith.constant 0 : index
    %0 = vector.load %arg2[%c0, %c0_0] : memref<8x48xbf16, #tpu.memory_space<vmem>>, vector<8x48xbf16>
    %c0_1 = arith.constant 0 : index
    %c0_2 = arith.constant 0 : index
    %c0_3 = arith.constant 0 : index
    %1 = vector.load %arg3[%c0_1, %c0_2, %c0_3] : memref<1x48x256xbf16, #tpu.memory_space<vmem>>, vector<1x48x256xbf16>
    %2 = vector.shape_cast %1 : vector<1x48x256xbf16> to vector<48x256xbf16>
    %cst = arith.constant dense<0.000000e+00> : vector<8x256xf32>
    %3 = tpu.matmul %0, %2, %cst {dimension_numbers = #tpu.dot_dimension_numbers<[1], [0], [0], [1], [0, 0, 1, 1], [], []>} : vector<8x48xbf16>, vector<48x256xbf16>, vector<8x256xf32> -> vector<8x256xf32>
    %4 = arith.truncf %3 : vector<8x256xf32> to vector<8x256xbf16>
    %c0_4 = arith.constant 0 : index
    %c0_5 = arith.constant 0 : index
    %c0_6 = arith.constant 0 : index
    %5 = vector.load %arg4[%c0_4, %c0_5, %c0_6] : memref<1x8x256xbf16, #tpu.memory_space<vmem>>, vector<1x8x256xbf16>
    %6 = vector.shape_cast %5 : vector<1x8x256xbf16> to vector<8x256xbf16>
    %7 = vector.shape_cast %4 : vector<8x256xbf16> to vector<1x8x256xbf16>
    tpu.vector_store %arg4[%c0_4, %c0_5, %c0_6], %7 {strides = array<i32>} : memref<1x8x256xbf16, #tpu.memory_space<vmem>>, vector<1x8x256xbf16>,
    %cst_7 = arith.constant 0.000000e+00 : f32
    %8 = vector.broadcast %cst_7 : f32 to vector<8x128xf32>
    %c0_8 = arith.constant 0 : index
    %c0_9 = arith.constant 0 : index
    %c0_10 = arith.constant 0 : index
    %c0_11 = arith.constant 0 : index
    %9 = vector.load %arg5[%c0_8, %c0_9, %c0_10, %c0_11] : memref<1x1x8x128xf32, #tpu.memory_space<vmem>>, vector<1x1x8x128xf32>
    %10 = vector.shape_cast %9 : vector<1x1x8x128xf32> to vector<8x128xf32>
    %11 = vector.shape_cast %8 : vector<8x128xf32> to vector<1x1x8x128xf32>
    tpu.vector_store %arg5[%c0_8, %c0_9, %c0_10, %c0_11], %11 {strides = array<i32>} : memref<1x1x8x128xf32, #tpu.memory_space<vmem>>, vector<1x1x8x128xf32>,
    %cst_12 = arith.constant 0.000000e+00 : f32
    %12 = vector.broadcast %cst_12 : f32 to vector<8x128xf32>
    %c0_13 = arith.constant 0 : index
    %c0_14 = arith.constant 0 : index
    %c0_15 = arith.constant 0 : index
    %c0_16 = arith.constant 0 : index
    %13 = vector.load %arg6[%c0_13, %c0_14, %c0_15, %c0_16] : memref<1x1x8x128xf32, #tpu.memory_space<vmem>>, vector<1x1x8x128xf32>
    %14 = vector.shape_cast %13 : vector<1x1x8x128xf32> to vector<8x128xf32>
    %15 = vector.shape_cast %12 : vector<8x128xf32> to vector<1x1x8x128xf32>
    tpu.vector_store %arg6[%c0_13, %c0_14, %c0_15, %c0_16], %15 {strides = array<i32>} : memref<1x1x8x128xf32, #tpu.memory_space<vmem>>, vector<1x1x8x128xf32>,
    %c0_17 = arith.constant 0 : index
    %c0_18 = arith.constant 0 : index
    %c0_19 = arith.constant 0 : index
    %16 = vector.load %arg4[%c0_17, %c0_18, %c0_19] : memref<1x8x256xbf16, #tpu.memory_space<vmem>>, vector<1x8x128xbf16>
    %17 = vector.shape_cast %16 : vector<1x8x128xbf16> to vector<8x128xbf16>
    %18 = arith.extf %17 : vector<8x128xbf16> to vector<8x128xf32>
    %c0_20 = arith.constant 0 : index
    %c0_21 = arith.constant 0 : index
    %c0_22 = arith.constant 0 : index
    %c0_23 = arith.constant 0 : index
    %19 = vector.load %arg5[%c0_20, %c0_21, %c0_22, %c0_23] : memref<1x1x8x128xf32, #tpu.memory_space<vmem>>, vector<1x1x8x128xf32>
    %20 = vector.shape_cast %19 : vector<1x1x8x128xf32> to vector<8x128xf32>
    %21 = arith.addf %20, %18 : vector<8x128xf32>
    %c0_24 = arith.constant 0 : index
    %c0_25 = arith.constant 0 : index
    %c0_26 = arith.constant 0 : index
    %c0_27 = arith.constant 0 : index
    %22 = vector.load %arg5[%c0_24, %c0_25, %c0_26, %c0_27] : memref<1x1x8x128xf32, #tpu.memory_space<vmem>>, vector<1x1x8x128xf32>
    %23 = vector.shape_cast %22 : vector<1x1x8x128xf32> to vector<8x128xf32>
    %24 = vector.shape_cast %21 : vector<8x128xf32> to vector<1x1x8x128xf32>
    tpu.vector_store %arg5[%c0_24, %c0_25, %c0_26, %c0_27], %24 {strides = array<i32>} : memref<1x1x8x128xf32, #tpu.memory_space<vmem>>, vector<1x1x8x128xf32>,
    %c0_28 = arith.constant 0 : index
    %c0_29 = arith.constant 0 : index
    %c0_30 = arith.constant 0 : index
    %c0_31 = arith.constant 0 : index
    %25 = vector.load %arg6[%c0_28, %c0_29, %c0_30, %c0_31] : memref<1x1x8x128xf32, #tpu.memory_space<vmem>>, vector<1x1x8x128xf32>
    %26 = vector.shape_cast %25 : vector<1x1x8x128xf32> to vector<8x128xf32>
    %27 = arith.mulf %18, %18 : vector<8x128xf32>
    %28 = arith.addf %26, %27 : vector<8x128xf32>
    %c0_32 = arith.constant 0 : index
    %c0_33 = arith.constant 0 : index
    %c0_34 = arith.constant 0 : index
    %c0_35 = arith.constant 0 : index
    %29 = vector.load %arg6[%c0_32, %c0_33, %c0_34, %c0_35] : memref<1x1x8x128xf32, #tpu.memory_space<vmem>>, vector<1x1x8x128xf32>
    %30 = vector.shape_cast %29 : vector<1x1x8x128xf32> to vector<8x128xf32>
    %31 = vector.shape_cast %28 : vector<8x128xf32> to vector<1x1x8x128xf32>
    tpu.vector_store %arg6[%c0_32, %c0_33, %c0_34, %c0_35], %31 {strides = array<i32>} : memref<1x1x8x128xf32, #tpu.memory_space<vmem>>, vector<1x1x8x128xf32>,
    %c0_36 = arith.constant 0 : index
    %c0_37 = arith.constant 0 : index
    %c128 = arith.constant 128 : index
    %32 = vector.load %arg4[%c0_36, %c0_37, %c128] : memref<1x8x256xbf16, #tpu.memory_space<vmem>>, vector<1x8x128xbf16>
    %33 = vector.shape_cast %32 : vector<1x8x128xbf16> to vector<8x128xbf16>
    %34 = arith.extf %33 : vector<8x128xbf16> to vector<8x128xf32>
    %c0_38 = arith.constant 0 : index
    %c0_39 = arith.constant 0 : index
    %c0_40 = arith.constant 0 : index
    %c0_41 = arith.constant 0 : index
    %35 = vector.load %arg5[%c0_38, %c0_39, %c0_40, %c0_41] : memref<1x1x8x128xf32, #tpu.memory_space<vmem>>, vector<1x1x8x128xf32>
    %36 = vector.shape_cast %35 : vector<1x1x8x128xf32> to vector<8x128xf32>
    %37 = arith.addf %36, %34 : vector<8x128xf32>
    %c0_42 = arith.constant 0 : index
    %c0_43 = arith.constant 0 : index
    %c0_44 = arith.constant 0 : index
    %c0_45 = arith.constant 0 : index
    %38 = vector.load %arg5[%c0_42, %c0_43, %c0_44, %c0_45] : memref<1x1x8x128xf32, #tpu.memory_space<vmem>>, vector<1x1x8x128xf32>
    %39 = vector.shape_cast %38 : vector<1x1x8x128xf32> to vector<8x128xf32>
    %40 = vector.shape_cast %37 : vector<8x128xf32> to vector<1x1x8x128xf32>
    tpu.vector_store %arg5[%c0_42, %c0_43, %c0_44, %c0_45], %40 {strides = array<i32>} : memref<1x1x8x128xf32, #tpu.memory_space<vmem>>, vector<1x1x8x128xf32>,
    %c0_46 = arith.constant 0 : index
    %c0_47 = arith.constant 0 : index
    %c0_48 = arith.constant 0 : index
    %c0_49 = arith.constant 0 : index
    %41 = vector.load %arg6[%c0_46, %c0_47, %c0_48, %c0_49] : memref<1x1x8x128xf32, #tpu.memory_space<vmem>>, vector<1x1x8x128xf32>
    %42 = vector.shape_cast %41 : vector<1x1x8x128xf32> to vector<8x128xf32>
    %43 = arith.mulf %34, %34 : vector<8x128xf32>
    %44 = arith.addf %42, %43 : vector<8x128xf32>
    %c0_50 = arith.constant 0 : index
    %c0_51 = arith.constant 0 : index
    %c0_52 = arith.constant 0 : index
    %c0_53 = arith.constant 0 : index
    %45 = vector.load %arg6[%c0_50, %c0_51, %c0_52, %c0_53] : memref<1x1x8x128xf32, #tpu.memory_space<vmem>>, vector<1x1x8x128xf32>
    %46 = vector.shape_cast %45 : vector<1x1x8x128xf32> to vector<8x128xf32>
    %47 = vector.shape_cast %44 : vector<8x128xf32> to vector<1x1x8x128xf32>
    tpu.vector_store %arg6[%c0_50, %c0_51, %c0_52, %c0_53], %47 {strides = array<i32>} : memref<1x1x8x128xf32, #tpu.memory_space<vmem>>, vector<1x1x8x128xf32>,
    return
  }
  func.func @transform_0(%arg0: i32, %arg1: i32) -> (i32, i32) {
    %c0_i32 = arith.constant 0 : i32
    %c0_i32_0 = arith.constant 0 : i32
    %c0_i32_1 = arith.constant 0 : i32
    return %c0_i32, %c0_i32_0 : i32, i32
  }
  func.func @transform_1(%arg0: i32, %arg1: i32) -> (i32, i32, i32) {
    %c0_i32 = arith.constant 0 : i32
    %c0_i32_0 = arith.constant 0 : i32
    return %arg0, %c0_i32, %arg1 : i32, i32, i32
  }
  func.func @transform_2(%arg0: i32, %arg1: i32) -> (i32, i32, i32) {
    %c0_i32 = arith.constant 0 : i32
    %c0_i32_0 = arith.constant 0 : i32
    return %arg0, %c0_i32, %arg1 : i32, i32, i32
  }
  func.func @transform_3(%arg0: i32, %arg1: i32) -> (i32, i32, i32, i32) {
    %c0_i32 = arith.constant 0 : i32
    %c0_i32_0 = arith.constant 0 : i32
    %c0_i32_1 = arith.constant 0 : i32
    return %arg0, %arg1, %c0_i32, %c0_i32_0 : i32, i32, i32, i32
  }
  func.func @transform_4(%arg0: i32, %arg1: i32) -> (i32, i32, i32, i32) {
    %c0_i32 = arith.constant 0 : i32
    %c0_i32_0 = arith.constant 0 : i32
    %c0_i32_1 = arith.constant 0 : i32
    return %arg0, %arg1, %c0_i32, %c0_i32_0 : i32, i32, i32, i32
  }
}

module attributes {stable_mosaic.version = 11 : i64} {
  func.func @bn_relu_kernel(%arg0: i32, %arg1: i32, %arg2: memref<1x8x256xbf16, #tpu.memory_space<vmem>>, %arg3: memref<8x1xf32, #tpu.memory_space<vmem>>, %arg4: memref<8x1xf32, #tpu.memory_space<vmem>>, %arg5: memref<1x8x256xf32, #tpu.memory_space<vmem>>) attributes {dimension_semantics = [#tpu.dimension_semantics<parallel>, #tpu.dimension_semantics<parallel>], iteration_bounds = array<i64: 2, 1>, scalar_prefetch = 0 : i64, scratch_operands = 0 : i64, tpu.core_type = #tpu.core_type<tc>, window_params = [{transform_indices = @transform_0, window_bounds = array<i64: 1, 8, 256>}, {pipeline_mode = #tpu.pipeline_mode<synchronous>, transform_indices = @transform_1, window_bounds = array<i64: 8, 1>}, {pipeline_mode = #tpu.pipeline_mode<synchronous>, transform_indices = @transform_2, window_bounds = array<i64: 8, 1>}, {transform_indices = @transform_3, window_bounds = array<i64: 1, 8, 256>}]} {
    %c0 = arith.constant 0 : index
    %c0_0 = arith.constant 0 : index
    %c0_1 = arith.constant 0 : index
    %0 = vector.load %arg2[%c0, %c0_0, %c0_1] : memref<1x8x256xbf16, #tpu.memory_space<vmem>>, vector<1x8x256xbf16>
    %1 = vector.shape_cast %0 : vector<1x8x256xbf16> to vector<8x256xbf16>
    %2 = arith.extf %1 : vector<8x256xbf16> to vector<8x256xf32>
    %c0_2 = arith.constant 0 : index
    %c0_3 = arith.constant 0 : index
    %3 = vector.load %arg3[%c0_2, %c0_3] : memref<8x1xf32, #tpu.memory_space<vmem>>, vector<8x1xf32>
    %4 = vector.broadcast %3 : vector<8x1xf32> to vector<8x256xf32>
    %5 = arith.mulf %2, %4 : vector<8x256xf32>
    %c0_4 = arith.constant 0 : index
    %c0_5 = arith.constant 0 : index
    %6 = vector.load %arg4[%c0_4, %c0_5] : memref<8x1xf32, #tpu.memory_space<vmem>>, vector<8x1xf32>
    %7 = vector.broadcast %6 : vector<8x1xf32> to vector<8x256xf32>
    %8 = arith.addf %5, %7 : vector<8x256xf32>
    %cst = arith.constant 0.000000e+00 : f32
    %9 = vector.broadcast %cst : f32 to vector<8x256xf32>
    %10 = arith.maximumf %8, %9 : vector<8x256xf32>
    %c0_6 = arith.constant 0 : index
    %c0_7 = arith.constant 0 : index
    %c0_8 = arith.constant 0 : index
    %11 = vector.load %arg5[%c0_6, %c0_7, %c0_8] : memref<1x8x256xf32, #tpu.memory_space<vmem>>, vector<1x8x256xf32>
    %12 = vector.shape_cast %11 : vector<1x8x256xf32> to vector<8x256xf32>
    %13 = vector.shape_cast %10 : vector<8x256xf32> to vector<1x8x256xf32>
    tpu.vector_store %arg5[%c0_6, %c0_7, %c0_8], %13 {strides = array<i32>} : memref<1x8x256xf32, #tpu.memory_space<vmem>>, vector<1x8x256xf32>,
    return
  }
  func.func @transform_0(%arg0: i32, %arg1: i32) -> (i32, i32, i32) {
    %c0_i32 = arith.constant 0 : i32
    %c0_i32_0 = arith.constant 0 : i32
    return %arg0, %c0_i32, %arg1 : i32, i32, i32
  }
  func.func @transform_1(%arg0: i32, %arg1: i32) -> (i32, i32) {
    %c0_i32 = arith.constant 0 : i32
    %c0_i32_0 = arith.constant 0 : i32
    %c0_i32_1 = arith.constant 0 : i32
    return %c0_i32, %c0_i32_0 : i32, i32
  }
  func.func @transform_2(%arg0: i32, %arg1: i32) -> (i32, i32) {
    %c0_i32 = arith.constant 0 : i32
    %c0_i32_0 = arith.constant 0 : i32
    %c0_i32_1 = arith.constant 0 : i32
    return %c0_i32, %c0_i32_0 : i32, i32
  }
  func.func @transform_3(%arg0: i32, %arg1: i32) -> (i32, i32, i32) {
    %c0_i32 = arith.constant 0 : i32
    %c0_i32_0 = arith.constant 0 : i32
    return %arg0, %c0_i32, %arg1 : i32, i32, i32
  }
}

</mosaic_0001>

<bundles_post_ra>
// kernel: standard_cnn_block.2
= control target key start
LH: loop header
LB: loop body
LE: loop exit
PB: predicated region body
PF: predicated region fallthrough
CT: control target
= control target key end

     0   :  { %s653_s15 = smov 0   ;;  %s655_s16 = smov 0   ;;  %s699_s0 = inlined_call_operand.vmem [shape: bf16[8,48], index: 0, kind: input, shape index: {}]   ;;  %s700_s1 = inlined_call_operand.vmem [shape: bf16[2,48,256], index: 1, kind: input, shape index: {}]   ;;  %s701_s2 = inlined_call_operand.vmem [shape: bf16[2,8,256], index: 2, kind: output, shape index: {0}]   ;;  %s702_s3 = inlined_call_operand.vmem [shape: f32[2,1,8,128], index: 3, kind: output, shape index: {1}]   ;;  %s703_s4 = inlined_call_operand.vmem [shape: f32[2,1,8,128], index: 4, kind: output, shape index: {2}]  }
   0x1   :  { %s657_s17 = smov 0  }
   0x2 LB: > { %s27_s18 = sadd.s32 1, %s622_s16  ;;  %p537_p0 = scmp.ge.s32.totalorder %s626_s17, 1  ;;  %s626_s17 = sphi %s657_s17, %s15_s17   ;;  %s622_s16 = sphi %s655_s16, %s705_s16   ;;  %s618_s15 = sphi %s653_s15, %s704_s15  }
   0x3   : > { %p29_p1 = scmp.ge.s32.totalorder %s27_s18, 2  ;;  %p192_p2 = scmp.lt.s32.totalorder %s626_s17, 3 }
   0x5   : > { %s707_s18 = smov (%p29_p1, %s27_s18), 0  ;;  %p193_p3 = pnand %p537_p0, %p192_p2 }
   0x6   : > { %p241_p4 = scmp.lt.s32.totalorder (!%p193_p3), %s618_s15, 1 }
   0x7   : > { %196 = sbr.rel (%p193_p3) target bundleno = 174 (0xae), region = 28 }
   0xc   : > { %s709_s15 = smov (!%p241_p4, %s618_s15), 1  ;;  %v275_v18 = vld [vmem:[%s699_s0] sm:$0xf]  ;;  %vm312_vm0 = vcmask 392192  }
   0xd   : > { %s578_s19 = smul.u32 48, %s709_s15  ;;  %s571_s25 = sshll.u32 %s709_s15, 3 }
   0xe   : > { %s258_s28 = scalar_lea.vmem %s701_s2, %s571_s25  ;;  %s266_s5 = scalar_lea.vmem %s702_s3, %s571_s25 }
   0xf   : > { %s248_s22 = scalar_lea.vmem %s700_s1, %s578_s19  ;;  %s273_s8 = scalar_lea.vmem %s703_s4, %s571_s25 }
  0x10   : > { %v561_v0 = vld [vmem:[%s248_s22 + $0x20] sm:$0xf]  ;;  %v577_v1 = vld [vmem:[%s248_s22 + $0x24] sm:$0xf0]  ;;  %v576_v2 = vld [vmem:[%s248_s22 + $0x24] sm:$0xf] }
  0x11   : > { %v562_v3 = vor.u32 %v577_v1, %v561_v0  ;;  %v563_v4 = vld [vmem:[%s248_s22 + $0x28] sm:$0xf0]  ;;  %v553_v5 = vld [vmem:[%s248_s22 + $0x10] sm:$0xf]  ;;  %v575_v6 = vld [vmem:[%s248_s22 + $0x14] sm:$0xf0] }
  0x12   : > { %v566_v7 = vor.u32 %v576_v2, %v563_v4  ;;  %v574_v8 = vld [vmem:[%s248_s22 + $0x14] sm:$0xf]  ;;  %v555_v9 = vld [vmem:[%s248_s22 + $0x18] sm:$0xf0]  ;;  %v554_v10 = vor.u32 %v575_v6, %v553_v5  ;;  %v545_v12 = vld [vmem:[%s248_s22] sm:$0xf] }
  0x13   : > { %321 = vmatpush.bf16.msra.mxu0 %v562_v3  ;;  %v558_v11 = vor.u32 %v574_v8, %v555_v9  ;;  %v573_v13 = vld [vmem:[%s248_s22 + $0x4] sm:$0xf0]  ;;  %v572_v14 = vld [vmem:[%s248_s22 + $0x4] sm:$0xf]  ;;  %v547_v15 = vld [vmem:[%s248_s22 + $0x8] sm:$0xf0] }
  0x14   : > { %334 = vmatpush.bf16.msra.mxu1 %v566_v7  ;;  %v546_v16 = vor.u32 %v573_v13, %v545_v12  ;;  %v550_v17 = vor.u32 %v572_v14, %v547_v15 }
  0x17   : > { %322 = vmatpush.bf16.msra.mxu0 %v554_v10 }
  0x18   : > { %335 = vmatpush.bf16.msra.mxu1 %v558_v11 }
  0x1b   : > { %323 = vmatpush.bf16.msra.mxu0 %v546_v16 }
  0x1c   : > { %336 = vmatpush.bf16.msra.mxu1 %v550_v17 }
  0x1e   : > { %567 = vmatmul.msk.bf16.vlgmr.msra.gmra.mxu0 %vm312_vm0, %v275_v18 }
  0x1f   : > { %568 = vmatmul.msk.bf16.vlgmr.msra.gmra.mxu1 %vm312_vm0, %v275_v18 }
  0x9b   : > { %v325_v19 = vpop.f32.mrf.mxu0 }
  0x9c   : > { %v338_v20 = vpop.f32.mrf.mxu1 }
  0x9d   : > { %v342_v21 = vpack.c.bf16 %v338_v20, %v325_v19 }
  0x9f   : > { %343 = vst [vmem:[%s258_s28] sm:$0xff] %v342_v21 }
  0xa3   : > { %v327_v22 = vpop.f32.mrf.mxu0 }
  0xa4   : > { %v340_v23 = vpop.f32.mrf.mxu1 }
  0xa6   : > { %v346_v24 = vld [vmem:[%s258_s28] sm:$0xff]  }
  0xa7   : > { %v347_v25 = vunpack.c.l.bf16 %v346_v24  ;;  %v356_v26 = vunpack.c.h.bf16 %v346_v24 }
  0xa9   : > { %v352_v27 = vmul.f32 %v347_v25, %v347_v25  ;;  %v358_v28 = vadd.f32 %v356_v26, %v347_v25  ;;  %v361_v29 = vmul.f32 %v356_v26, %v356_v26 }
  0xab   : > { %359 = vst [vmem:[%s266_s5] sm:$0xff] %v358_v28  ;;  %v362_v30 = vadd.f32 %v361_v29, %v352_v27 }
  0xad   : > { %363 = vst [vmem:[%s273_s8] sm:$0xff] %v362_v30 }
  0xae PF: > { %s15_s17 = sadd.s32 1, %s626_s17   ;;  %s704_s15 = smov %s622_s16 }
  0xaf   : > { %p12_p5 = scmp.ge.s32.totalorder %s15_s17, 4   ;;  %s705_s16 = smov %s707_s18 }
  0xb1   :  { %14 = sbr.rel (!%p12_p5) target bundleno = 2 (0x2), region = 82 }

// kernel: standard_cnn_block.3
= control target key start
LH: loop header
LB: loop body
LE: loop exit
PB: predicated region body
PF: predicated region fallthrough
CT: control target
= control target key end

     0   :  { %s404_s12 = smov 0   ;;  %s406_s13 = smov 0   ;;  %s443_s0 = inlined_call_operand.vmem [shape: bf16[2,8,256], index: 0, kind: input, shape index: {}]   ;;  %s444_s1 = inlined_call_operand.vmem [shape: f32[8,1], index: 1, kind: input, shape index: {}]   ;;  %s445_s2 = inlined_call_operand.vmem [shape: f32[8,1], index: 2, kind: input, shape index: {}]   ;;  %s446_s3 = inlined_call_operand.vmem [shape: f32[2,8,256], index: 3, kind: output, shape index: {}]  }
   0x1   :  { %s408_s14 = smov 0  }
   0x2 LB: > { %s25_s15 = sadd.s32 1, %s377_s13  ;;  %p324_p0 = scmp.ge.s32.totalorder %s381_s14, 1  ;;  %s381_s14 = sphi %s408_s14, %s13_s14   ;;  %s377_s13 = sphi %s406_s13, %s448_s13   ;;  %s373_s12 = sphi %s404_s12, %s447_s12  }
   0x3   : > { %p27_p1 = scmp.ge.s32.totalorder %s25_s15, 2  ;;  %p158_p2 = scmp.lt.s32.totalorder %s381_s14, 3 }
   0x5   : > { %s450_s15 = smov (%p27_p1, %s25_s15), 0  ;;  %p159_p3 = pnand %p324_p0, %p158_p2 }
   0x6   : > { %p191_p4 = scmp.lt.s32.totalorder (!%p159_p3), %s373_s12, 1 }
   0x7   : > { %162 = sbr.rel (%p159_p3) target bundleno = 143 (0x8f), region = 32 }
   0xc   : > { %v213_v0 = vld [vmem:[%s444_s1] sm:$0xff]  ;;  %v383_v1 = vmov 0   ;;  %s452_s12 = smov (!%p191_p4, %s373_s12), 1 }
   0xd   : > { %358 = vset.pattern.permute.xlu0 %v383_v1  ;;  %v221_v2 = vld [vmem:[%s445_s2] sm:$0xff]  ;;  %s331_s20 = sshll.u32 %s452_s12, 3  ;;  %s332_s24 = sshll.u32 %s452_s12, 4 }
   0xe   : > { %216 = vperm.xlu0 %358, %v213_v0   ;;  %s198_s23 = scalar_lea.vmem %s443_s0, %s331_s20  ;;  %s208_s27 = scalar_lea.vmem %s446_s3, %s332_s24 }
   0xf   : > { %v210_v4 = vld [vmem:[%s198_s23] sm:$0xff] }
  0x10   : > { %v211_v5 = vunpack.c.l.bf16 %v210_v4  ;;  %v212_v6 = vunpack.c.h.bf16 %v210_v4 }
  0x16   : > { %224 = vperm.xlu0 %358, %v221_v2  }
  0x80   : > { %v217_v3 = vpop.permute.xlu0 %216 }
  0x81   : > { %v219_v7 = vmul.f32 %v217_v3, %v211_v5  ;;  %v220_v8 = vmul.f32 %v217_v3, %v212_v6 }
  0x88   : > { %v225_v9 = vpop.permute.xlu0 %224 }
  0x89   : > { %v227_v10 = vadd.f32 %v225_v9, %v219_v7  ;;  %v228_v11 = vadd.f32 %v225_v9, %v220_v8 }
  0x8b   : > { %v229_v12 = vmax.f32 %v227_v10, 0.0  ;;  %v230_v13 = vmax.f32 %v228_v11, 0.0 }
  0x8d   : > { %231 = vst [vmem:[%s208_s27] sm:$0xff] %v229_v12 }
  0x8e   : > { %232 = vst [vmem:[%s208_s27 + $0x8] sm:$0xff] %v230_v13 }
  0x8f PF: > { %s13_s14 = sadd.s32 1, %s381_s14   ;;  %s447_s12 = smov %s377_s13 }
  0x90   : > { %p10_p5 = scmp.ge.s32.totalorder %s13_s14, 4   ;;  %s448_s13 = smov %s450_s15 }
  0x92   :  { %12 = sbr.rel (!%p10_p5) target bundleno = 2 (0x2), region = 62 }

</bundles_post_ra>
